<compile_context>
chip_gen: v7x
topology: tpu7x:2x2x1
jax: 0.10.0
libtpu: 0.0.40
codegen_flags: <defaults>
</compile_context>

<pallas_src>
import jax
import jax.numpy as jnp
from jax import lax
from jax.experimental import pallas as pl
from jax.experimental.pallas import tpu as pltpu

_NORM_EPS = 1e-12                     # torch F.normalize eps (clamps the 2-norm)
_NORM_EPS_SQ = _NORM_EPS * _NORM_EPS  # equivalent clamp on the squared norm
_EPS = 1e-7                           # cosD clamp eps in _dihedrals


def _dihedral_embed_kernel(xc_ref, w_ref, b_ref, o_ref):
    """xc_ref: (3, TR, 6) -- x/y/z of the 6 halo atoms of each (batch, residue) row.
    w_ref: (6, D), b_ref: (1, D) -- resident in VMEM.
    o_ref: (TR, D) output tile (one embedded residue per row)."""
    x = xc_ref[0]                      # (TR, 6)
    y = xc_ref[1]
    z = xc_ref[2]

    # --- 5 bond vectors per row: U[s] = normalize(atom[s+1] - atom[s]) ---- (TR, 5)
    dx = x[:, 1:] - x[:, :-1]
    dy = y[:, 1:] - y[:, :-1]
    dz = z[:, 1:] - z[:, :-1]
    inv = lax.rsqrt(jnp.maximum(dx * dx + dy * dy + dz * dz, _NORM_EPS_SQ))
    ux, uy, uz = dx * inv, dy * inv, dz * inv

    # --- 4 normalized cross products c[s] = normalize(U[s] x U[s+1]) ------ (TR, 4)
    ax, ay, az = ux[:, :-1], uy[:, :-1], uz[:, :-1]     # U[s]
    bx, by, bz = ux[:, 1:], uy[:, 1:], uz[:, 1:]        # U[s+1]
    cx = ay * bz - az * by
    cy = az * bx - ax * bz
    cz = ax * by - ay * bx
    cinv = lax.rsqrt(jnp.maximum(cx * cx + cy * cy + cz * cz, _NORM_EPS_SQ))
    cx, cy, cz = cx * cinv, cy * cinv, cz * cinv

    # --- dihedral cos / sin for (phi, psi, omega) ------------------------- (TR, 3)
    n2x, n2y, n2z = cx[:, :3], cy[:, :3], cz[:, :3]     # n_2 = c[t]
    n1x, n1y, n1z = cx[:, 1:], cy[:, 1:], cz[:, 1:]     # n_1 = c[t+1]
    cos_d = n2x * n1x + n2y * n1y + n2z * n1z
    cos_d = jnp.clip(cos_d, -1.0 + _EPS, 1.0 - _EPS)

    u2x, u2y, u2z = ux[:, :3], uy[:, :3], uz[:, :3]     # u_2 = U[t]
    dp = u2x * n1x + u2y * n1y + u2z * n1z
    sgn = jnp.where(dp > 0.0, 1.0, jnp.where(dp < 0.0, -1.0, 0.0))

    # D = sgn * acos(cos_d); exact identities.  Padded / degenerate angles have
    # sgn == 0 (zero halo bond) -> D == 0 -> cos = 1, sin = 0.
    cosf = jnp.where(sgn == 0.0, 1.0, cos_d)
    sinf = sgn * jnp.sqrt(jnp.maximum(1.0 - cos_d * cos_d, 0.0))

    # --- fused node_embedding: one matmul, one bias add, one dense store ---
    feat = jnp.concatenate([cosf, sinf], axis=-1)       # (TR, 6)
    out = jnp.dot(feat, w_ref[...], preferred_element_type=jnp.float32) + b_ref[...]
    o_ref[...] = out.astype(o_ref.dtype)


def _round_up(v, m):
    return -(-v // m) * m


def dihedral_features(X, W, bias, out_dtype=jnp.float32):
    """X: (B, L, A>=3, 3) coords, W: (6, D), bias: (D,).  Returns (B, L, D)."""
    B, L = X.shape[0], X.shape[1]
    N = 3 * L
    D_out = W.shape[1]

    # ---- wrapper: gather per-residue halo atoms, component-major -----------
    Xb = X[:, :, :3, :].astype(jnp.float32).reshape(B, N, 3)          # (B, 3L, 3)
    slot_idx = jnp.clip(
        3 * jnp.arange(L)[:, None] + jnp.arange(6)[None, :] - 1, 0, N - 1
    )                                                                  # (L, 6)
    Xg = jnp.take(Xb, slot_idx.reshape(-1), axis=1).reshape(B, L, 6, 3)
    Xc = jnp.transpose(Xg, (3, 0, 1, 2)).reshape(3, B * L, 6)          # (3, R, 6)

    # ---- row tiling: >=2 grid steps when possible, <=512 rows per step -----
    R = B * L
    if R <= 8:
        TR = 8
    else:
        TR = min(512, _round_up(_round_up(R, 2) // 2, 8))
    Rp = _round_up(R, TR)
    if Rp != R:
        Xc = jnp.pad(Xc, ((0, 0), (0, Rp - R), (0, 0)))   # junk rows -> sgn==0, finite
    grid = (Rp // TR,)

    out = pl.pallas_call(
        _dihedral_embed_kernel,
        grid=grid,
        in_specs=[
            pl.BlockSpec((3, TR, 6), lambda i: (0, i, 0)),
            pl.BlockSpec((6, D_out), lambda i: (0, 0)),    # W resident in VMEM
            pl.BlockSpec((1, D_out), lambda i: (0, 0)),    # bias resident in VMEM
        ],
        out_specs=pl.BlockSpec((TR, D_out), lambda i: (i, 0)),
        out_shape=jax.ShapeDtypeStruct((Rp, D_out), out_dtype),
        compiler_params=pltpu.CompilerParams(
            dimension_semantics=("parallel",),             # rows are independent
            vmem_limit_bytes=32 * 1024 * 1024,             # fits v5e/v6e/v7x alike
        ),
    )(Xc, W.astype(jnp.float32), bias.reshape(1, D_out).astype(jnp.float32))

    return out[:R].reshape(B, L, D_out)


def _reference(X, W, bias):
    """Pure-JAX transcription of the PyTorch forward (sanity check)."""
    B, L = X.shape[0], X.shape[1]
    Xf = X[:, :, :3, :].reshape(B, 3 * L, 3)
    dX = Xf[:, 1:, :] - Xf[:, :-1, :]
    U = dX / jnp.maximum(jnp.linalg.norm(dX, axis=-1, keepdims=True), _NORM_EPS)
    u_2, u_1, u_0 = U[:, :-2], U[:, 1:-1], U[:, 2:]
    n_2 = jnp.cross(u_2, u_1)
    n_2 = n_2 / jnp.maximum(jnp.linalg.norm(n_2, axis=-1, keepdims=True), _NORM_EPS)
    n_1 = jnp.cross(u_1, u_0)
    n_1 = n_1 / jnp.maximum(jnp.linalg.norm(n_1, axis=-1, keepdims=True), _NORM_EPS)
    cosD = jnp.clip((n_2 * n_1).sum(-1), -1.0 + _EPS, 1.0 - _EPS)
    D = jnp.sign((u_2 * n_1).sum(-1)) * jnp.arccos(cosD)
    D = jnp.pad(D, ((0, 0), (1, 2)))
    D = D.reshape(B, L, 3)
    feat = jnp.concatenate([jnp.cos(D), jnp.sin(D)], axis=-1)
    return feat @ W + bias


if __name__ == "__main__":
    B, L, A, EMBED = 2, 8, 4, 32   # batch, residues, atoms per residue, node_embed_dim

    key = jax.random.PRNGKey(0)
    kx, kw, kb = jax.random.split(key, 3)
    X = jax.random.normal(kx, (B, L, A, 3), jnp.float32)
    limit = float(1.0 / jnp.sqrt(6.0))   # nn.Linear-style uniform init bound (fan_in=6)
    W = jax.random.uniform(kw, (6, EMBED), jnp.float32, -limit, limit)
    bias = jax.random.uniform(kb, (EMBED,), jnp.float32, -limit, limit)

    out = jax.block_until_ready(dihedral_features(X, W, bias))
    ref = jax.block_until_ready(_reference(X, W, bias))

    assert out.shape == (B, L, EMBED), out.shape
    max_err = float(jnp.max(jnp.abs(out - ref)))
    assert max_err < 1e-3, f"max abs error too large: {max_err}"
    print("KERNEL_OK")
</pallas_src>

<mosaic_0001>
module attributes {stable_mosaic.version = 11 : i64} {
  func.func @_dihedral_embed_kernel(%arg0: i32, %arg1: memref<3x8x6xf32, #tpu.memory_space<vmem>>, %arg2: memref<6x32xf32, #tpu.memory_space<vmem>>, %arg3: memref<1x32xf32, #tpu.memory_space<vmem>>, %arg4: memref<8x32xf32, #tpu.memory_space<vmem>>) attributes {dimension_semantics = [#tpu.dimension_semantics<parallel>], iteration_bounds = array<i64: 2>, scalar_prefetch = 0 : i64, scratch_operands = 0 : i64, tpu.core_type = #tpu.core_type<tc>, window_params = [{transform_indices = @transform_0, window_bounds = array<i64: 3, 8, 6>}, {pipeline_mode = #tpu.pipeline_mode<synchronous>, transform_indices = @transform_1, window_bounds = array<i64: 6, 32>}, {pipeline_mode = #tpu.pipeline_mode<synchronous>, transform_indices = @transform_2, window_bounds = array<i64: 1, 32>}, {transform_indices = @transform_3, window_bounds = array<i64: 8, 32>}]} {
    %c0 = arith.constant 0 : index
    %c0_0 = arith.constant 0 : index
    %c0_1 = arith.constant 0 : index
    %0 = vector.load %arg1[%c0, %c0_0, %c0_1] : memref<3x8x6xf32, #tpu.memory_space<vmem>>, vector<1x8x6xf32>
    %1 = vector.shape_cast %0 : vector<1x8x6xf32> to vector<8x6xf32>
    %c1 = arith.constant 1 : index
    %c0_2 = arith.constant 0 : index
    %c0_3 = arith.constant 0 : index
    %2 = vector.load %arg1[%c1, %c0_2, %c0_3] : memref<3x8x6xf32, #tpu.memory_space<vmem>>, vector<1x8x6xf32>
    %3 = vector.shape_cast %2 : vector<1x8x6xf32> to vector<8x6xf32>
    %c2 = arith.constant 2 : index
    %c0_4 = arith.constant 0 : index
    %c0_5 = arith.constant 0 : index
    %4 = vector.load %arg1[%c2, %c0_4, %c0_5] : memref<3x8x6xf32, #tpu.memory_space<vmem>>, vector<1x8x6xf32>
    %5 = vector.shape_cast %4 : vector<1x8x6xf32> to vector<8x6xf32>
    %6 = vector.extract_strided_slice %1 {offsets = [0, 1], sizes = [8, 5], strides = [1, 1]} : vector<8x6xf32> to vector<8x5xf32>
    %7 = vector.extract_strided_slice %1 {offsets = [0, 0], sizes = [8, 5], strides = [1, 1]} : vector<8x6xf32> to vector<8x5xf32>
    %8 = arith.subf %6, %7 : vector<8x5xf32>
    %9 = vector.extract_strided_slice %3 {offsets = [0, 1], sizes = [8, 5], strides = [1, 1]} : vector<8x6xf32> to vector<8x5xf32>
    %10 = vector.extract_strided_slice %3 {offsets = [0, 0], sizes = [8, 5], strides = [1, 1]} : vector<8x6xf32> to vector<8x5xf32>
    %11 = arith.subf %9, %10 : vector<8x5xf32>
    %12 = vector.extract_strided_slice %5 {offsets = [0, 1], sizes = [8, 5], strides = [1, 1]} : vector<8x6xf32> to vector<8x5xf32>
    %13 = vector.extract_strided_slice %5 {offsets = [0, 0], sizes = [8, 5], strides = [1, 1]} : vector<8x6xf32> to vector<8x5xf32>
    %14 = arith.subf %12, %13 : vector<8x5xf32>
    %15 = arith.mulf %8, %8 : vector<8x5xf32>
    %16 = arith.mulf %11, %11 : vector<8x5xf32>
    %17 = arith.addf %15, %16 : vector<8x5xf32>
    %18 = arith.mulf %14, %14 : vector<8x5xf32>
    %19 = arith.addf %17, %18 : vector<8x5xf32>
    %cst = arith.constant 1.000000e-24 : f32
    %20 = vector.broadcast %cst : f32 to vector<8x5xf32>
    %21 = arith.maximumf %19, %20 : vector<8x5xf32>
    %22 = math.rsqrt %21 : vector<8x5xf32>
    %23 = arith.mulf %8, %22 : vector<8x5xf32>
    %24 = arith.mulf %11, %22 : vector<8x5xf32>
    %25 = arith.mulf %14, %22 : vector<8x5xf32>
    %26 = vector.extract_strided_slice %23 {offsets = [0, 0], sizes = [8, 4], strides = [1, 1]} : vector<8x5xf32> to vector<8x4xf32>
    %27 = vector.extract_strided_slice %24 {offsets = [0, 0], sizes = [8, 4], strides = [1, 1]} : vector<8x5xf32> to vector<8x4xf32>
    %28 = vector.extract_strided_slice %25 {offsets = [0, 0], sizes = [8, 4], strides = [1, 1]} : vector<8x5xf32> to vector<8x4xf32>
    %29 = vector.extract_strided_slice %23 {offsets = [0, 1], sizes = [8, 4], strides = [1, 1]} : vector<8x5xf32> to vector<8x4xf32>
    %30 = vector.extract_strided_slice %24 {offsets = [0, 1], sizes = [8, 4], strides = [1, 1]} : vector<8x5xf32> to vector<8x4xf32>
    %31 = vector.extract_strided_slice %25 {offsets = [0, 1], sizes = [8, 4], strides = [1, 1]} : vector<8x5xf32> to vector<8x4xf32>
    %32 = arith.mulf %27, %31 : vector<8x4xf32>
    %33 = arith.mulf %28, %30 : vector<8x4xf32>
    %34 = arith.subf %32, %33 : vector<8x4xf32>
    %35 = arith.mulf %28, %29 : vector<8x4xf32>
    %36 = arith.mulf %26, %31 : vector<8x4xf32>
    %37 = arith.subf %35, %36 : vector<8x4xf32>
    %38 = arith.mulf %26, %30 : vector<8x4xf32>
    %39 = arith.mulf %27, %29 : vector<8x4xf32>
    %40 = arith.subf %38, %39 : vector<8x4xf32>
    %41 = arith.mulf %34, %34 : vector<8x4xf32>
    %42 = arith.mulf %37, %37 : vector<8x4xf32>
    %43 = arith.addf %41, %42 : vector<8x4xf32>
    %44 = arith.mulf %40, %40 : vector<8x4xf32>
    %45 = arith.addf %43, %44 : vector<8x4xf32>
    %cst_6 = arith.constant 1.000000e-24 : f32
    %46 = vector.broadcast %cst_6 : f32 to vector<8x4xf32>
    %47 = arith.maximumf %45, %46 : vector<8x4xf32>
    %48 = math.rsqrt %47 : vector<8x4xf32>
    %49 = arith.mulf %34, %48 : vector<8x4xf32>
    %50 = arith.mulf %37, %48 : vector<8x4xf32>
    %51 = arith.mulf %40, %48 : vector<8x4xf32>
    %52 = vector.extract_strided_slice %49 {offsets = [0, 0], sizes = [8, 3], strides = [1, 1]} : vector<8x4xf32> to vector<8x3xf32>
    %53 = vector.extract_strided_slice %50 {offsets = [0, 0], sizes = [8, 3], strides = [1, 1]} : vector<8x4xf32> to vector<8x3xf32>
    %54 = vector.extract_strided_slice %51 {offsets = [0, 0], sizes = [8, 3], strides = [1, 1]} : vector<8x4xf32> to vector<8x3xf32>
    %55 = vector.extract_strided_slice %49 {offsets = [0, 1], sizes = [8, 3], strides = [1, 1]} : vector<8x4xf32> to vector<8x3xf32>
    %56 = vector.extract_strided_slice %50 {offsets = [0, 1], sizes = [8, 3], strides = [1, 1]} : vector<8x4xf32> to vector<8x3xf32>
    %57 = vector.extract_strided_slice %51 {offsets = [0, 1], sizes = [8, 3], strides = [1, 1]} : vector<8x4xf32> to vector<8x3xf32>
    %58 = arith.mulf %52, %55 : vector<8x3xf32>
    %59 = arith.mulf %53, %56 : vector<8x3xf32>
    %60 = arith.addf %58, %59 : vector<8x3xf32>
    %61 = arith.mulf %54, %57 : vector<8x3xf32>
    %62 = arith.addf %60, %61 : vector<8x3xf32>
    %cst_7 = arith.constant -0.99999988 : f32
    %cst_8 = arith.constant 0.99999988 : f32
    %63 = vector.broadcast %cst_7 : f32 to vector<8x3xf32>
    %64 = arith.maximumf %63, %62 : vector<8x3xf32>
    %65 = vector.broadcast %cst_8 : f32 to vector<8x3xf32>
    %66 = arith.minimumf %65, %64 : vector<8x3xf32>
    %67 = vector.extract_strided_slice %23 {offsets = [0, 0], sizes = [8, 3], strides = [1, 1]} : vector<8x5xf32> to vector<8x3xf32>
    %68 = vector.extract_strided_slice %24 {offsets = [0, 0], sizes = [8, 3], strides = [1, 1]} : vector<8x5xf32> to vector<8x3xf32>
    %69 = vector.extract_strided_slice %25 {offsets = [0, 0], sizes = [8, 3], strides = [1, 1]} : vector<8x5xf32> to vector<8x3xf32>
    %70 = arith.mulf %67, %55 : vector<8x3xf32>
    %71 = arith.mulf %68, %56 : vector<8x3xf32>
    %72 = arith.addf %70, %71 : vector<8x3xf32>
    %73 = arith.mulf %69, %57 : vector<8x3xf32>
    %74 = arith.addf %72, %73 : vector<8x3xf32>
    %cst_9 = arith.constant 0.000000e+00 : f32
    %75 = vector.broadcast %cst_9 : f32 to vector<8x3xf32>
    %76 = arith.cmpf ogt, %74, %75 : vector<8x3xf32>
    %cst_10 = arith.constant 0.000000e+00 : f32
    %77 = vector.broadcast %cst_10 : f32 to vector<8x3xf32>
    %78 = arith.cmpf olt, %74, %77 : vector<8x3xf32>
    %cst_11 = arith.constant -1.000000e+00 : f32
    %cst_12 = arith.constant 0.000000e+00 : f32
    %79 = vector.broadcast %cst_11 : f32 to vector<8x3xf32>
    %80 = vector.broadcast %cst_12 : f32 to vector<8x3xf32>
    %81 = arith.select %78, %79, %80 : vector<8x3xi1>, vector<8x3xf32>
    %cst_13 = arith.constant 1.000000e+00 : f32
    %82 = vector.broadcast %cst_13 : f32 to vector<8x3xf32>
    %83 = arith.select %76, %82, %81 : vector<8x3xi1>, vector<8x3xf32>
    %cst_14 = arith.constant 0.000000e+00 : f32
    %84 = vector.broadcast %cst_14 : f32 to vector<8x3xf32>
    %85 = arith.cmpf oeq, %83, %84 : vector<8x3xf32>
    %cst_15 = arith.constant 1.000000e+00 : f32
    %86 = vector.broadcast %cst_15 : f32 to vector<8x3xf32>
    %87 = arith.select %85, %86, %66 : vector<8x3xi1>, vector<8x3xf32>
    %88 = arith.mulf %66, %66 : vector<8x3xf32>
    %cst_16 = arith.constant 1.000000e+00 : f32
    %89 = vector.broadcast %cst_16 : f32 to vector<8x3xf32>
    %90 = arith.subf %89, %88 : vector<8x3xf32>
    %cst_17 = arith.constant 0.000000e+00 : f32
    %91 = vector.broadcast %cst_17 : f32 to vector<8x3xf32>
    %92 = arith.maximumf %90, %91 : vector<8x3xf32>
    %93 = math.sqrt %92 : vector<8x3xf32>
    %94 = arith.mulf %83, %93 : vector<8x3xf32>
    %95 = tpu.concatenate %87, %94 in 1 : vector<8x3xf32>, vector<8x3xf32> -> vector<8x6xf32>
    %c0_18 = arith.constant 0 : index
    %c0_19 = arith.constant 0 : index
    %96 = vector.load %arg2[%c0_18, %c0_19] : memref<6x32xf32, #tpu.memory_space<vmem>>, vector<6x32xf32>
    %cst_20 = arith.constant dense<0.000000e+00> : vector<8x32xf32>
    %97 = tpu.matmul %95, %96, %cst_20 {dimension_numbers = #tpu.dot_dimension_numbers<[1], [0], [0], [1], [0, 0, 1, 1], [], []>} : vector<8x6xf32>, vector<6x32xf32>, vector<8x32xf32> -> vector<8x32xf32>
    %c0_21 = arith.constant 0 : index
    %c0_22 = arith.constant 0 : index
    %98 = vector.load %arg3[%c0_21, %c0_22] : memref<1x32xf32, #tpu.memory_space<vmem>>, vector<1x32xf32>
    %99 = vector.broadcast %98 : vector<1x32xf32> to vector<8x32xf32>
    %100 = arith.addf %97, %99 : vector<8x32xf32>
    %c0_23 = arith.constant 0 : index
    %c0_24 = arith.constant 0 : index
    %101 = vector.load %arg4[%c0_23, %c0_24] : memref<8x32xf32, #tpu.memory_space<vmem>>, vector<8x32xf32>
    tpu.vector_store %arg4[%c0_23, %c0_24], %100 {strides = array<i32>} : memref<8x32xf32, #tpu.memory_space<vmem>>, vector<8x32xf32>,
    return
  }
  func.func @transform_0(%arg0: i32) -> (i32, i32, i32) {
    %c0_i32 = arith.constant 0 : i32
    %c0_i32_0 = arith.constant 0 : i32
    %c0_i32_1 = arith.constant 0 : i32
    return %c0_i32, %arg0, %c0_i32_0 : i32, i32, i32
  }
  func.func @transform_1(%arg0: i32) -> (i32, i32) {
    %c0_i32 = arith.constant 0 : i32
    %c0_i32_0 = arith.constant 0 : i32
    %c0_i32_1 = arith.constant 0 : i32
    return %c0_i32, %c0_i32_0 : i32, i32
  }
  func.func @transform_2(%arg0: i32) -> (i32, i32) {
    %c0_i32 = arith.constant 0 : i32
    %c0_i32_0 = arith.constant 0 : i32
    %c0_i32_1 = arith.constant 0 : i32
    return %c0_i32, %c0_i32_0 : i32, i32
  }
  func.func @transform_3(%arg0: i32) -> (i32, i32) {
    %c0_i32 = arith.constant 0 : i32
    %c0_i32_0 = arith.constant 0 : i32
    return %arg0, %c0_i32 : i32, i32
  }
}

</mosaic_0001>

<bundles_post_ra>
// kernel: tpu_custom_call.1
= control target key start
LH: loop header
LB: loop body
LE: loop exit
PB: predicated region body
PF: predicated region fallthrough
CT: control target
= control target key end

     0   :  { %8 = vsyncpa [#allocation4], 0  ;;  %s778_s0 = inlined_call_operand.vmem [shape: f32[3,16,6], index: 0, kind: input, shape index: {}]   ;;  %s779_s1 = inlined_call_operand.vmem [shape: f32[6,32], index: 1, kind: input, shape index: {}]   ;;  %s780_s2 = inlined_call_operand.vmem [shape: f32[1,32], index: 2, kind: input, shape index: {}]   ;;  %s781_s3 = inlined_call_operand.hbm [shape: f32[16,32], index: 3, kind: output, shape index: {}]  }
   0x1   :  { %10 = vsyncpa [#allocation4 + $0x1], 0  ;;  %s655_s12 = smov 0   ;;  %s657_s13 = smov 0  }
   0x2   :  { %s659_s14 = smov 0   ;;  %s661_s15 = smov 0  }
   0x3 LB: > { %s489_s16 = sadd.s32 4294967295, %s627_s15   ;;  %s490_s17 = sadd.s32 4294967294, %s627_s15   ;;  %s627_s15 = sphi %s661_s15, %s787_s15   ;;  %s623_s14 = sphi %s659_s14, %s786_s14   ;;  %s619_s13 = sphi %s657_s13, %s785_s13   ;;  %s615_s12 = sphi %s655_s12, %s784_s12  }
   0x4   : > { %s678_s18 = sadd.s32 1, %s627_s15   ;;  %s23_s19 = sadd.s32 1, %s623_s14 }
   0x5   : > { %s20_s20 = ssub.s32 %s627_s15, %s678_s18  ;;  %p30_p0 = scmp.ne.s32.totalorder %s623_s14, %s619_s13 }
   0x6   : > { %p21_p1 = scmp.eq.s32.totalorder %s20_s20, 0  ;;  %p31_p2 = scmp.eq.s32.totalorder %s627_s15, 0 }
   0x7   : > { %p102_p3 = scmp.eq.s32.totalorder %s489_s16, 1  ;;  %p107_p4 = scmp.ne.s32.totalorder %s619_s13, %s615_s12 }
   0x8   : > { %s691_s21 = scalar_select %p21_p1, %s623_s14, %s23_s19  }
   0x9   : > { %p32_p5 = por %p31_p2, %p30_p0  ;;  %p693_p6 = por %p102_p3, %p30_p0 }
   0xa   : > { %p108_p7 = scmp.eq.s32.totalorder %s490_s17, 1  ;;  %p492_p9 = scmp.ge.s32.totalorder %s627_s15, 2 }
   0xc   : > { %p697_p8 = por %p108_p7, %p107_p4  ;;  %130 = sbr.rel (%p492_p9) target bundleno = 26 (0x1a), region = 24 }
  0x13   : > { %133 = sbr.rel (!%p32_p5) target bundleno = 26 (0x1a), region = 28  ;;  %s135_s24 = sand.u32 (%p32_p5), 1, %s623_s14  }
  0x14   : > { %s493_s25 = sshll.u32 (%p32_p5), %s627_s15, 3  ;;  %s513_s26 = smul.u32 (%p32_p5), 24, %s135_s24 }
  0x15   : > { %s139_s29 = scalar_lea.vmem (%p32_p5), %s778_s0, %s493_s25 }
  0x16   : > { %v171_v0 = vld [vmem:[%s139_s29] sm:$0xff] (%p32_p5)  ;;  %v173_v1 = vld [vmem:[%s139_s29 + $0x10] sm:$0xff] (%p32_p5)  ;;  %s137_s30 = scalar_lea.vmem (%p32_p5), [#allocation2], %s513_s26 }
  0x17   : > { %v175_v2 = vld [vmem:[%s139_s29 + $0x20] sm:$0xff] (%p32_p5)  ;;  %172 = vst [vmem:[%s137_s30] sm:$0xff] (%p32_p5), %v171_v0  ;;  %174 = vst [vmem:[%s137_s30 + $0x8] sm:$0xff] (%p32_p5), %v173_v1 }
  0x18   : > { %176 = vst [vmem:[%s137_s30 + $0x10] sm:$0xff] (%p32_p5), %v175_v2 }
  0x1a PF: > { %p494_p10 = scmp.ge.s32.totalorder %s627_s15, 1  ;;  %p181_p11 = scmp.lt.s32.totalorder %s627_s15, 3 }
  0x1c   : > { %p182_p12 = pnand %p494_p10, %p181_p11 }
  0x1d   : > { %s712_s4 = sand.u32 (!%p182_p12), 1, %s619_s13   ;;  %s629_s7 = smov (!%p182_p12), 1   ;;  %v631_v40 = vmov (!%p182_p12), 0.0   ;;  %v323_v1 = vld [vmem:[%s779_s1] sm:$0x3f] (!%p182_p12)  ;;  %vm335_vm3 = vcmask (!%p182_p12), 1045504  }
  0x1e   : > { %185 = sbr.rel (%p182_p12) target bundleno = 813 (0x32d), region = 66  ;;  %s630_s8 = smov (!%p182_p12), 127   ;;  %508 = vmatprep.subr.mxu0 (!%p182_p12), %v631_v40  ;;  %vm632_vm4 = vmmov (!%p182_p12), 0   ;;  %vm321_vm7 = vcmask (!%p182_p12), 23552   ;;  %vm331_vm8 = vcmask (!%p182_p12), 48128   ;;  %vm409_vm9 = vcmask (!%p182_p12), 261120  }
  0x1f   : > { %s514_s5 = smul.u32 (!%p182_p12), 24, %s712_s4  ;;  %509 = vmatpush3.msk.msra.mxu0 (!%p182_p12), %vm335_vm3, %v323_v1  ;;  %510 = vmatprep.mubr.msk.f32.mxu0 (!%p182_p12), %vm632_vm4, %v631_v40  ;;  %s633_s11 = smov (!%p182_p12), 2  }
  0x20   : > { %s495_s17 = sshll.u32 (!%p182_p12), %s712_s4, 3  ;;  %s503_s24 = sshll.u32 (!%p182_p12), %s489_s16, 7 }
  0x21   : > { %s190_s6 = scalar_lea.vmem (!%p182_p12), [#allocation2], %s514_s5  ;;  %s210_s25 = scalar_lea.vmem (!%p182_p12), [#allocation3], %s495_s17 }
  0x22   : > { %v211_v3 = vld [vmem:[%s190_s6] sm:$0xff] (!%p182_p12)  ;;  %v497_v4 = vld [vmem:[%s190_s6 + $0x10] sm:$0xff] (!%p182_p12)  ;;  %v496_v5 = vld [vmem:[%s190_s6 + $0x8] sm:$0xff] (!%p182_p12)  ;;  %s425_s26 = sshll.u32 (!%p182_p12), %s210_s25, 4  ;;  %s734_s29 = scalar_lea.hbm (!%p182_p12), %s781_s3, %s503_s24  ;;  %s736_s26 = int_to_ptr.vmem [resolvable:$true] %s425_s26 }
  0x23   : > { %217 = vrot.lane.b32.xlu0 (!%p182_p12), %v211_v3, %s629_s7  ;;  %227 = vrot.lane.b32.xlu1 (!%p182_p12), %v497_v4, %s629_s7  ;;  %s412_s30 = scalar_lea.sflag (!%p182_p12), [#allocation4], %s712_s4  ;;  %s565_s5 = scalar_lea.vmem (!%p182_p12), %s736_s26, 128 }
  0x24   : > { %p566_p13 = scmp.ne.s32.totalorder (!%p182_p12), %s736_s26, %s565_s5  ;;  %s634_s16 = smov (!%p182_p12), [#allocation3]  }
  0x25   : > { %s569_s6 = sshll.u32 %s634_s16, 4  ;;  %s570_s6 = int_to_ptr.vmem [resolvable:$false] %s569_s6 }
  0x26   : > { %p567_p0 = pnand %p566_p13, %p693_p6  ;;  %p572_p2 = scmp.lt.s32.totalorder %s736_s26, %s570_s6 }
  0x27   : > { %222 = vrot.lane.b32.xlu0 %v496_v5, %s629_s7  ;;  %s571_s7 = scalar_lea.vmem %s570_s6, 256 }
  0x28   : > { %p568_p1 = pneg %p567_p0  ;;  %p573_p3 = scmp.lt.s32.totalorder %s571_s7, %s565_s5 }
  0x2a   : > { %p574_p4 = por %p573_p3, %p572_p2 }
  0x2c   : > { %p575_p5 = pnand %p574_p4, %p568_p1 }
  0x95   : > { %v218_v6 = vpop.permute.xlu0 %217  ;;  %v228_v7 = vpop.permute.xlu1 %227 }
  0x96   : > { %v220_v8 = vsub.f32 %v211_v3, %v218_v6  ;;  %v230_v9 = vsub.f32 %v497_v4, %v228_v7 }
  0x98   : > { %v231_v12 = vmul.f32 %v220_v8, %v220_v8  ;;  %v234_v14 = vmul.f32 %v230_v9, %v230_v9 }
  0x99   : > { %v223_v10 = vpop.permute.xlu0 %222 }
  0x9a   : > { %v225_v11 = vsub.f32 %v496_v5, %v223_v10 }
  0x9c   : > { %v232_v13 = vmul.f32 %v225_v11, %v225_v11 }
  0x9e   : > { %v233_v15 = vadd.f32 %v232_v13, %v231_v12 }
  0xa0   : > { %v235_v16 = vadd.f32 %v234_v14, %v233_v15 }
  0xa2   : > { %v236_v17 = vmax.f32 %v235_v16, 1e-24 }
  0xa4   : > { %559 = vrsqrt.f32 %v236_v17 }
  0xae   : > { %v560_v18 = vpop.eup %559 }
  0xaf   : > { %v240_v19 = vmul.f32 %v560_v18, %v230_v9  ;;  %v239_v20 = vmul.f32 %v560_v18, %v225_v11  ;;  %v238_v21 = vmul.f32 %v560_v18, %v220_v8  ;;  %v499_v11 = vld [vmem:[%s780_s2] ss:$0 sm:$0xff] }
  0xb1   : > { %242 = vrot.lane.b32.xlu1 %v240_v19, %s630_s8  ;;  %247 = vrot.lane.b32.xlu0 %v239_v20, %s630_s8 }
  0xb5   : > { %253 = vrot.lane.b32.xlu1 %v238_v21, %s630_s8 }
 0x123   : > { %v243_v22 = vpop.permute.xlu1 %242  ;;  %v248_v23 = vpop.permute.xlu0 %247 }
 0x124   : > { %v245_v24 = vmul.f32 %v243_v22, %v239_v20  ;;  %v250_v25 = vmul.f32 %v248_v23, %v240_v19  ;;  %v257_v26 = vmul.f32 %v243_v22, %v238_v21  ;;  %v259_v29 = vmul.f32 %v248_v23, %v238_v21 }
 0x126   : > { %v251_v28 = vsub.f32 %v245_v24, %v250_v25 }
 0x127   : > { %v254_v27 = vpop.permute.xlu1 %253 }
 0x128   : > { %v256_v30 = vmul.f32 %v254_v27, %v240_v19  ;;  %v260_v31 = vmul.f32 %v254_v27, %v239_v20  ;;  %v262_v34 = vmul.f32 %v251_v28, %v251_v28 }
 0x12a   : > { %v258_v32 = vsub.f32 %v256_v30, %v257_v26  ;;  %v261_v33 = vsub.f32 %v259_v29, %v260_v31 }
 0x12c   : > { %v263_v35 = vmul.f32 %v258_v32, %v258_v32  ;;  %v265_v37 = vmul.f32 %v261_v33, %v261_v33 }
 0x12e   : > { %v264_v36 = vadd.f32 %v263_v35, %v262_v34 }
 0x130   : > { %v266_v38 = vadd.f32 %v265_v37, %v264_v36 }
 0x132   : > { %v267_v39 = vmax.f32 %v266_v38, 1e-24 }
 0x134   : > { %561 = vrsqrt.f32 %v267_v39 }
 0x13e   : > { %v562_v41 = vpop.eup %561 }
 0x13f   : > { %v270_v42 = vmul.f32 %v562_v41, %v258_v32  ;;  %v269_v43 = vmul.f32 %v562_v41, %v251_v28  ;;  %v271_v44 = vmul.f32 %v562_v41, %v261_v33 }
 0x141   : > { %278 = vrot.lane.b32.xlu1 %v270_v42, %s630_s8  ;;  %273 = vrot.lane.b32.xlu0 %v269_v43, %s630_s8 }
 0x145   : > { %284 = vrot.lane.b32.xlu0 %v271_v44, %s630_s8 }
 0x1b3   : > { %v279_v45 = vpop.permute.xlu1 %278  ;;  %v274_v46 = vpop.permute.xlu0 %273 }
 0x1b4   : > { %v281_v47 = vmul.f32 %v279_v45, %v270_v42  ;;  %v292_v48 = vmul.f32 %v279_v45, %v239_v20  ;;  %v276_v49 = vmul.f32 %v274_v46, %v269_v43  ;;  %v291_v50 = vmul.f32 %v274_v46, %v238_v21 }
 0x1b6   : > { %v282_v52 = vadd.f32 %v281_v47, %v276_v49  ;;  %v293_v53 = vadd.f32 %v292_v48, %v291_v50 }
 0x1b7   : > { %v285_v51 = vpop.permute.xlu0 %284 }
 0x1b8   : > { %v287_v54 = vmul.f32 %v285_v51, %v271_v44  ;;  %v294_v55 = vmul.f32 %v285_v51, %v240_v19 }
 0x1ba   : > { %v288_v56 = vadd.f32 %v287_v54, %v282_v52  ;;  %v295_v57 = vadd.f32 %v294_v55, %v293_v53 }
 0x1bc   : > { %v498_v58 = vclamps-f32 %v288_v56, 0.9999999  ;;  %vm296_vm0 = vcmp.gt.f32.partialorder %v295_v57, 0.0  ;;  %vm297_vm1 = vcmp.lt.f32.partialorder %v295_v57, 0.0 }
 0x1bd   : > { %v298_v59 = vsel %vm297_vm1, -1.0, %v631_v40 }
 0x1be   : > { %v299_v60 = vsel %vm296_vm0, 1.0, %v298_v59  ;;  %v302_v61 = vmul.f32 %v498_v58, %v498_v58 }
 0x1bf   : > { %vm300_vm2 = vcmp.eq.f32.partialorder %v299_v60, 0.0 }
 0x1c0   : > { %v301_v62 = vsel %vm300_vm2, 1.0, %v498_v58  ;;  %v303_v63 = vsub.f32 1.0, %v302_v61 }
 0x1c1   : > { %314 = vrot.lane.b32.xlu1 %v301_v62, %s630_s8 }
 0x1c2   : > { %v304_v0 = vmax.f32 %v303_v63, 0.0 }
 0x1c4   : > { %563 = vrsqrt.f32 %v304_v0  ;;  %vm307_vm5 = vcmp.eq.f32.partialorder %v304_v0, inf  ;;  %v310_v4 = vand.u32 2147483648, %v304_v0  ;;  %vm309_vm6 = vcmp.eq.f32.partialorder %v304_v0, 0.0 }
 0x1ce   : > { %v564_v2 = vpop.eup %563 }
 0x1cf   : > { %v306_v3 = vmul.f32 %v564_v2, %v304_v0 }
 0x1d1   : > { %v308_v5 = vsel %vm307_vm5, %v304_v0, %v306_v3 }
 0x1d2   : > { %v311_v6 = vsel %vm309_vm6, %v310_v4, %v308_v5 }
 0x1d3   : > { %v312_v7 = vmul.f32 %v311_v6, %v299_v60 }
 0x1d5   : > { %318 = vrot.lane.b32.xlu0 %v312_v7, %s633_s11 }
 0x233   : > { %v315_v8 = vpop.permute.xlu1 %314 }
 0x247   : > { %v319_v9 = vpop.permute.xlu0 %318 }
 0x248   : > { %v322_v10 = vsel %vm321_vm7, %v315_v8, %v319_v9 }
 0x249   : > { %511 = vmatmul.mubr.msk.f32.vlgmr.msra.gmra.mrb[0].mxu0 %vm331_vm8, %v322_v10 }
 0x31c   : > { %v405_v12 = vpop.f32.mrb[0].mxu0 }
 0x31d   : > { %v406_v13 = vadd.f32 %v499_v11, %v405_v12  ;;  %v512_v14 = vpop.f32.mrb[1].mxu0 }
 0x31f   : > { %410 = vst.msk [vmem:[%s210_s25] sm:$0xff] %vm409_vm9, %v406_v13 }
 0x320   : > { %578 = shalt.err (!%p575_p5)
}
 0x321   : > { %s579_s4 = scalar_lea.hbm %s734_s29, 128  ;;  %s583_s10 = scalar_lea.hbm %s781_s3, 256 }
 0x322   : > { %p580_p7 = scmp.ne.s32.totalorder %s734_s29, %s579_s4  ;;  %p584_p12 = scmp.lt.u32.totalorder %s734_s29, %s781_s3 }
 0x323   : > { %p585_p13 = scmp.lt.u32.totalorder %s583_s10, %s579_s4  ;;  %p587_p1 = scmp.lt.u32.totalorder %s579_s4, %s734_s29 }
 0x324   : > { %p581_p10 = pnand %p580_p7, %p693_p6 }
 0x325   : > { %p586_p0 = por %p585_p13, %p584_p12 }
 0x326   : > { %p582_p11 = pneg %p581_p10 }
 0x327   : > { %p588_p2 = por %p587_p1, %p586_p0 }
 0x329   : > { %p589_p3 = pnand %p588_p2, %p582_p11 }
 0x32b   : > { %592 = shalt.err (!%p589_p3)
}
 0x32c   : > { %515 = dma.vmem_to_hbm [thread:$0]  (%p693_p6), %s736_s26, 128, %s734_s29, %s412_s30  }
 0x32d PF: > { %s437_s19 = sand.u32 1, %s615_s12   ;;  %p518_p4 = pnand %p492_p9, %p697_p8 }
 0x32e   : > { %s438_s20 = scalar_lea.sflag [#allocation4], %s437_s19 }
 0x32f   : > { %610 = dma.done.wait (!%p518_p4), %s438_s20, 128  }
 0x330   : > { %612 = vsyncadd (!%p518_p4), %s438_s20, 4294967168  ;;  %p13_p5 = scmp.ge.s32.totalorder %s678_s18, 4   ;;  %s784_s12 = smov %s619_s13 }
 0x331   : > { %s785_s13 = smov %s623_s14  ;;  %s786_s14 = smov %s691_s21 }
 0x332   : > { %s787_s15 = smov %s678_s18  ;;  %15 = sbr.rel (!%p13_p5) target bundleno = 3 (0x3), region = 112 }
 0x339   :  { %443 = vsyncpa [#allocation4], 1 }
 0x33a   :  { %445 = vsyncpa [#allocation4 + $0x1], 1 }

</bundles_post_ra>
